<compile_context>
chip_gen: v6e
topology: v6e:2x2x1
jax: 0.10.0
libtpu: 0.0.40
codegen_flags: <defaults>
</compile_context>

<pallas_src>
import jax
import jax.numpy as jnp
from jax.experimental import pallas as pl
from jax.experimental.pallas import tpu as pltpu

DELTA = 0.5
LAMBDA = 0.25
LANE = 128


def _round_up(x, m):
    return (x + m - 1) // m * m


def _round_down(x, m):
    return x // m * m


def _make_kernel(delta, lambda_val, tile_r, steps_per_core, total_rows):
    groups = tile_r // 8  # tile_r is always a multiple of 8

    def kernel(pred_ref, targ_ref, out_ref):
        c = pl.program_id(0)   # core split (core-parallel on v7x)
        j = pl.program_id(1)   # reduction step within this split (arbitrary)

        @pl.when(j == 0)
        def _():
            out_ref[...] = jnp.zeros_like(out_ref)

        p = pred_ref[...].astype(jnp.float32)
        t = targ_ref[...].astype(jnp.float32)
        diff = p - t
        sq = diff * diff
        # Mt + lambda*(1 - Mt)  ==  where(p > delta, 1, lambda): one select, one mul.
        w = jnp.where(p > delta, jnp.float32(1.0), jnp.float32(lambda_val))
        contrib = sq * w

        tile_idx = c * steps_per_core + j
        row0 = tile_idx * tile_r
        fully_valid = row0 + tile_r <= total_rows

        # Steady state: no row masking.  The (8,128)-grouped reshape is
        # layout-preserving, so this is pure VALU adds into the VMEM-resident
        # output accumulator.
        @pl.when(fully_valid)
        def _():
            out_ref[...] += contrib.reshape(groups, 8, LANE).sum(axis=0)

        # Only the tile straddling (or, on a clamped split, past) the end of
        # the array pays for the iota/compare/select row mask.
        @pl.when(jnp.logical_not(fully_valid))
        def _():
            row_ids = jax.lax.broadcasted_iota(jnp.int32, (tile_r, LANE), 0) + row0
            masked = jnp.where(row_ids < total_rows, contrib, jnp.float32(0.0))
            out_ref[...] += masked.reshape(groups, 8, LANE).sum(axis=0)

    return kernel


def _build_pallas_sum(rows, dtype, delta, lambda_val, num_splits, block_bytes,
                      vmem_limit, core_parallel):
    itemsize = jnp.dtype(dtype).itemsize
    sub_min = {4: 8, 2: 16, 1: 32}.get(itemsize, 8)

    max_rows = max(sub_min, _round_down(block_bytes // (LANE * itemsize), sub_min))
    rows_floor = _round_down(rows, sub_min)          # caller guarantees rows >= sub_min

    # First tile of every split is fully in-bounds (tile_r <= rows); the last
    # one may be a partial edge block handled by the in-kernel mask.
    tile_r = min(max_rows, rows_floor)
    steps_total = pl.cdiv(rows, tile_r)
    steps_per_core = pl.cdiv(steps_total, num_splits)
    n_tiles = num_splits * steps_per_core
    # Rebalance: shrink tiles so total coverage hugs `rows`, which usually
    # removes any fully-OOB trailing tile on the last split (no wasted DMA).
    tile_r = min(tile_r, _round_up(pl.cdiv(rows, n_tiles), sub_min))

    num_valid_tiles = pl.cdiv(rows, tile_r)
    has_oob_tile = n_tiles > num_valid_tiles

    if has_oob_tile:
        # A trailing logical tile starts past the array: clamp its block index
        # to a valid tile; the kernel masks its contribution to zero anyway.
        def in_map(c, j):
            return (jnp.minimum(c * steps_per_core + j, num_valid_tiles - 1), 0)
    else:
        def in_map(c, j):
            return (c * steps_per_core + j, 0)

    kernel = _make_kernel(float(delta), float(lambda_val), tile_r,
                          steps_per_core, rows)

    if core_parallel and num_splits > 1:
        semantics = (pltpu.CORE_PARALLEL, pltpu.ARBITRARY)
    else:
        semantics = (pltpu.ARBITRARY, pltpu.ARBITRARY)

    return pl.pallas_call(
        kernel,
        out_shape=jax.ShapeDtypeStruct((num_splits * 8, LANE), jnp.float32),
        grid_spec=pltpu.PrefetchScalarGridSpec(
            num_scalar_prefetch=0,
            grid=(num_splits, steps_per_core),
            in_specs=[pl.BlockSpec((tile_r, LANE), in_map),
                      pl.BlockSpec((tile_r, LANE), in_map)],
            out_specs=pl.BlockSpec((8, LANE), lambda c, j: (c, 0)),
        ),
        compiler_params=pltpu.CompilerParams(
            dimension_semantics=semantics,
            vmem_limit_bytes=vmem_limit),
    )


def _weighted_sq_sum(pred, targ, delta, lambda_val):
    """Pure-JAX weighted squared-error sum (used for tiny tails / fallback)."""
    p = pred.astype(jnp.float32)
    t = targ.astype(jnp.float32)
    sq = (p - t) ** 2
    w = jnp.where(p > delta, jnp.float32(1.0), jnp.float32(lambda_val))
    return jnp.sum(sq * w)


def _device_kind():
    try:
        return jax.devices()[0].device_kind.lower()
    except Exception:
        return ""


def mask_weighted_heatmap_loss(predicted_heatmap, target_heatmap,
                               delta=DELTA, lambda_val=LAMBDA):
    """predicted_heatmap, target_heatmap: NCHW arrays of the same shape."""
    assert predicted_heatmap.shape == target_heatmap.shape
    batch = predicted_heatmap.shape[0]

    pred = predicted_heatmap.reshape(-1)
    targ = target_heatmap.reshape(-1)
    n = pred.shape[0]

    itemsize = jnp.dtype(pred.dtype).itemsize
    sub_min = {4: 8, 2: 16, 1: 32}.get(itemsize, 8)

    rows = n // LANE
    rem = n - rows * LANE

    if rows < sub_min:
        # Tiny input: cheaper in plain JAX than a kernel launch.
        return _weighted_sq_sum(pred, targ, delta, lambda_val) / batch

    tail_sum = jnp.float32(0.0)
    if rem:
        # TODO(synk): fold the <=127-element flat tail into the kernel with a
        # lane mask on the last tile to avoid this prefix-slice copy.
        tail_sum = _weighted_sq_sum(pred[rows * LANE:], targ[rows * LANE:],
                                    delta, lambda_val)
        pred = pred[:rows * LANE]
        targ = targ[:rows * LANE]

    pred2d = pred.reshape(rows, LANE)   # contiguous reshape: free, no HBM copy
    targ2d = targ.reshape(rows, LANE)

    kind = _device_kind()
    is_v7 = ("v7" in kind) or ("7x" in kind)

    # Per-generation preferred configs (most aggressive first); the final
    # entry is a conservative configuration that should compile everywhere.
    if is_v7:
        cfgs = [
            dict(num_splits=2, block_bytes=4 << 20, vmem_limit=48 << 20,
                 core_parallel=True),
            dict(num_splits=2, block_bytes=2 << 20, vmem_limit=32 << 20,
                 core_parallel=True),
        ]
    else:
        # v5e / v6e: single TensorCore, ~2 MiB blocks already sit at the HBM
        # roofline; no split => no clamped fully-OOB tile, no wasted DMA.
        cfgs = [dict(num_splits=1, block_bytes=2 << 20, vmem_limit=32 << 20,
                     core_parallel=False)]
    cfgs.append(dict(num_splits=1, block_bytes=1 << 20, vmem_limit=None,
                     core_parallel=False))

    out = None
    last_err = None
    for cfg in cfgs:
        num_splits = cfg["num_splits"] if rows >= 2 * sub_min else 1
        try:
            call = _build_pallas_sum(rows, pred2d.dtype, delta, lambda_val,
                                     num_splits, cfg["block_bytes"],
                                     cfg["vmem_limit"], cfg["core_parallel"])
            out = call(pred2d, targ2d)
            break
        except Exception as e:   # compile/resource failure -> safer config
            last_err = e
    if out is None:
        raise last_err

    main_sum = jnp.sum(out)      # collapse the per-(sublane, lane) partials
    loss = (main_sum + tail_sum) / batch
    # torch.mean of a 0-d tensor is a no-op.
    return loss


def _reference(pred, targ, delta=DELTA, lambda_val=LAMBDA):
    p = pred.astype(jnp.float32)
    t = targ.astype(jnp.float32)
    sq = (p - t) ** 2
    mt = (p > delta).astype(jnp.float32)
    return jnp.sum(sq * (mt + lambda_val * (1.0 - mt))) / pred.shape[0]


if __name__ == "__main__":
    key = jax.random.PRNGKey(0)
    k1, k2 = jax.random.split(key)
    # small NCHW heatmaps: batch=2, channels=4, spatial=16x16
    pred = jax.random.uniform(k1, (2, 4, 16, 16), dtype=jnp.float32)
    targ = jax.random.uniform(k2, (2, 4, 16, 16), dtype=jnp.float32)

    loss = mask_weighted_heatmap_loss(pred, targ)
    loss = jax.block_until_ready(loss)

    ref = _reference(pred, targ)
    assert jnp.allclose(loss, ref, rtol=1e-5, atol=1e-5), (loss, ref)

    print("KERNEL_OK")
</pallas_src>

<mosaic_0001>
module attributes {stable_mosaic.version = 11 : i64} {
  func.func @kernel(%arg0: i32, %arg1: i32, %arg2: memref<16x128xf32, #tpu.memory_space<vmem>>, %arg3: memref<16x128xf32, #tpu.memory_space<vmem>>, %arg4: memref<8x128xf32, #tpu.memory_space<vmem>>) attributes {dimension_semantics = [#tpu.dimension_semantics<arbitrary>, #tpu.dimension_semantics<arbitrary>], iteration_bounds = array<i64: 1, 1>, scalar_prefetch = 0 : i64, scratch_operands = 0 : i64, tpu.core_type = #tpu.core_type<tc>, window_params = [{transform_indices = @transform_0, window_bounds = array<i64: 16, 128>}, {transform_indices = @transform_1, window_bounds = array<i64: 16, 128>}, {transform_indices = @transform_2, window_bounds = array<i64: 8, 128>}]} {
    %c0_i32 = arith.constant 0 : i32
    %0 = arith.cmpi eq, %arg1, %c0_i32 : i32
    %1 = arith.extui %0 : i1 to i32
    %c0_i32_0 = arith.constant 0 : i32
    %2 = arith.cmpi ne, %1, %c0_i32_0 : i32
    scf.if %2 {
      %cst_10 = arith.constant 0.000000e+00 : f32
      %23 = vector.broadcast %cst_10 : f32 to vector<8x128xf32>
      %c0_11 = arith.constant 0 : index
      %c0_12 = arith.constant 0 : index
      %24 = vector.load %arg4[%c0_11, %c0_12] : memref<8x128xf32, #tpu.memory_space<vmem>>, vector<8x128xf32>
      tpu.vector_store %arg4[%c0_11, %c0_12], %23 {strides = array<i32>} : memref<8x128xf32, #tpu.memory_space<vmem>>, vector<8x128xf32>,
    } else {
    }
    %c0 = arith.constant 0 : index
    %c0_1 = arith.constant 0 : index
    %3 = vector.load %arg2[%c0, %c0_1] : memref<16x128xf32, #tpu.memory_space<vmem>>, vector<16x128xf32>
    %c0_2 = arith.constant 0 : index
    %c0_3 = arith.constant 0 : index
    %4 = vector.load %arg3[%c0_2, %c0_3] : memref<16x128xf32, #tpu.memory_space<vmem>>, vector<16x128xf32>
    %5 = arith.subf %3, %4 : vector<16x128xf32>
    %6 = arith.mulf %5, %5 : vector<16x128xf32>
    %cst = arith.constant 5.000000e-01 : f32
    %7 = vector.broadcast %cst : f32 to vector<16x128xf32>
    %8 = arith.cmpf ogt, %3, %7 : vector<16x128xf32>
    %cst_4 = arith.constant 1.000000e+00 : f32
    %cst_5 = arith.constant 2.500000e-01 : f32
    %9 = vector.broadcast %cst_4 : f32 to vector<16x128xf32>
    %10 = vector.broadcast %cst_5 : f32 to vector<16x128xf32>
    %11 = arith.select %8, %9, %10 : vector<16x128xi1>, vector<16x128xf32>
    %12 = arith.mulf %6, %11 : vector<16x128xf32>
    %c1_i32 = arith.constant 1 : i32
    %13 = arith.muli %arg0, %c1_i32 : i32
    %14 = arith.addi %13, %arg1 : i32
    %c16_i32 = arith.constant 16 : i32
    %15 = arith.muli %14, %c16_i32 : i32
    %c16_i32_6 = arith.constant 16 : i32
    %16 = arith.addi %15, %c16_i32_6 : i32
    %c16_i32_7 = arith.constant 16 : i32
    %17 = arith.cmpi sle, %16, %c16_i32_7 : i32
    %18 = arith.extui %17 : i1 to i32
    %c0_i32_8 = arith.constant 0 : i32
    %19 = arith.cmpi ne, %18, %c0_i32_8 : i32
    scf.if %19 {
      %c0_10 = arith.constant 0 : index
      %c0_11 = arith.constant 0 : index
      %23 = vector.load %arg4[%c0_10, %c0_11] : memref<8x128xf32, #tpu.memory_space<vmem>>, vector<8x128xf32>
      %24 = vector.shape_cast %12 : vector<16x128xf32> to vector<2x8x128xf32>
      %cst_12 = arith.constant dense<0.000000e+00> : vector<8x128xf32>
      %25 = vector.multi_reduction <add>, %24, %cst_12 [0] : vector<2x8x128xf32> to vector<8x128xf32>
      %26 = arith.addf %23, %25 : vector<8x128xf32>
      %c0_13 = arith.constant 0 : index
      %c0_14 = arith.constant 0 : index
      %27 = vector.load %arg4[%c0_13, %c0_14] : memref<8x128xf32, #tpu.memory_space<vmem>>, vector<8x128xf32>
      tpu.vector_store %arg4[%c0_13, %c0_14], %26 {strides = array<i32>} : memref<8x128xf32, #tpu.memory_space<vmem>>, vector<8x128xf32>,
    } else {
    }
    %true = arith.constant true
    %20 = arith.xori %17, %true : i1
    %21 = arith.extui %20 : i1 to i32
    %c0_i32_9 = arith.constant 0 : i32
    %22 = arith.cmpi ne, %21, %c0_i32_9 : i32
    scf.if %22 {
      %23 = tpu.iota {dimensions = array<i32: 0>} : vector<16x128xi32>
      %24 = vector.broadcast %15 : i32 to vector<16x128xi32>
      %25 = arith.addi %23, %24 : vector<16x128xi32>
      %c16_i32_10 = arith.constant 16 : i32
      %26 = vector.broadcast %c16_i32_10 : i32 to vector<16x128xi32>
      %27 = arith.cmpi slt, %25, %26 : vector<16x128xi32>
      %cst_11 = arith.constant 0.000000e+00 : f32
      %28 = vector.broadcast %cst_11 : f32 to vector<16x128xf32>
      %29 = arith.select %27, %12, %28 : vector<16x128xi1>, vector<16x128xf32>
      %c0_12 = arith.constant 0 : index
      %c0_13 = arith.constant 0 : index
      %30 = vector.load %arg4[%c0_12, %c0_13] : memref<8x128xf32, #tpu.memory_space<vmem>>, vector<8x128xf32>
      %31 = vector.shape_cast %29 : vector<16x128xf32> to vector<2x8x128xf32>
      %cst_14 = arith.constant dense<0.000000e+00> : vector<8x128xf32>
      %32 = vector.multi_reduction <add>, %31, %cst_14 [0] : vector<2x8x128xf32> to vector<8x128xf32>
      %33 = arith.addf %30, %32 : vector<8x128xf32>
      %c0_15 = arith.constant 0 : index
      %c0_16 = arith.constant 0 : index
      %34 = vector.load %arg4[%c0_15, %c0_16] : memref<8x128xf32, #tpu.memory_space<vmem>>, vector<8x128xf32>
      tpu.vector_store %arg4[%c0_15, %c0_16], %33 {strides = array<i32>} : memref<8x128xf32, #tpu.memory_space<vmem>>, vector<8x128xf32>,
    } else {
    }
    return
  }
  func.func @transform_0(%arg0: i32, %arg1: i32) -> (i32, i32) {
    %c1_i32 = arith.constant 1 : i32
    %0 = arith.muli %arg0, %c1_i32 : i32
    %1 = arith.addi %0, %arg1 : i32
    %c0_i32 = arith.constant 0 : i32
    %c0_i32_0 = arith.constant 0 : i32
    return %1, %c0_i32 : i32, i32
  }
  func.func @transform_1(%arg0: i32, %arg1: i32) -> (i32, i32) {
    %c1_i32 = arith.constant 1 : i32
    %0 = arith.muli %arg0, %c1_i32 : i32
    %1 = arith.addi %0, %arg1 : i32
    %c0_i32 = arith.constant 0 : i32
    %c0_i32_0 = arith.constant 0 : i32
    return %1, %c0_i32 : i32, i32
  }
  func.func @transform_2(%arg0: i32, %arg1: i32) -> (i32, i32) {
    %c0_i32 = arith.constant 0 : i32
    %c0_i32_0 = arith.constant 0 : i32
    return %arg0, %c0_i32 : i32, i32
  }
}

module attributes {stable_mosaic.version = 11 : i64} {
  func.func @kernel(%arg0: i32, %arg1: i32, %arg2: memref<16x128xf32, #tpu.memory_space<vmem>>, %arg3: memref<16x128xf32, #tpu.memory_space<vmem>>, %arg4: memref<8x128xf32, #tpu.memory_space<vmem>>) attributes {dimension_semantics = [#tpu.dimension_semantics<arbitrary>, #tpu.dimension_semantics<arbitrary>], iteration_bounds = array<i64: 1, 1>, scalar_prefetch = 0 : i64, scratch_operands = 0 : i64, tpu.core_type = #tpu.core_type<tc>, window_params = [{transform_indices = @transform_0, window_bounds = array<i64: 16, 128>}, {transform_indices = @transform_1, window_bounds = array<i64: 16, 128>}, {transform_indices = @transform_2, window_bounds = array<i64: 8, 128>}]} {
    %c0_i32 = arith.constant 0 : i32
    %0 = arith.cmpi eq, %arg1, %c0_i32 : i32
    %1 = arith.extui %0 : i1 to i32
    %c0_i32_0 = arith.constant 0 : i32
    %2 = arith.cmpi ne, %1, %c0_i32_0 : i32
    scf.if %2 {
      %cst_10 = arith.constant 0.000000e+00 : f32
      %23 = vector.broadcast %cst_10 : f32 to vector<8x128xf32>
      %c0_11 = arith.constant 0 : index
      %c0_12 = arith.constant 0 : index
      %24 = vector.load %arg4[%c0_11, %c0_12] : memref<8x128xf32, #tpu.memory_space<vmem>>, vector<8x128xf32>
      tpu.vector_store %arg4[%c0_11, %c0_12], %23 {strides = array<i32>} : memref<8x128xf32, #tpu.memory_space<vmem>>, vector<8x128xf32>,
    } else {
    }
    %c0 = arith.constant 0 : index
    %c0_1 = arith.constant 0 : index
    %3 = vector.load %arg2[%c0, %c0_1] : memref<16x128xf32, #tpu.memory_space<vmem>>, vector<16x128xf32>
    %c0_2 = arith.constant 0 : index
    %c0_3 = arith.constant 0 : index
    %4 = vector.load %arg3[%c0_2, %c0_3] : memref<16x128xf32, #tpu.memory_space<vmem>>, vector<16x128xf32>
    %5 = arith.subf %3, %4 : vector<16x128xf32>
    %6 = arith.mulf %5, %5 : vector<16x128xf32>
    %cst = arith.constant 5.000000e-01 : f32
    %7 = vector.broadcast %cst : f32 to vector<16x128xf32>
    %8 = arith.cmpf ogt, %3, %7 : vector<16x128xf32>
    %cst_4 = arith.constant 1.000000e+00 : f32
    %cst_5 = arith.constant 2.500000e-01 : f32
    %9 = vector.broadcast %cst_4 : f32 to vector<16x128xf32>
    %10 = vector.broadcast %cst_5 : f32 to vector<16x128xf32>
    %11 = arith.select %8, %9, %10 : vector<16x128xi1>, vector<16x128xf32>
    %12 = arith.mulf %6, %11 : vector<16x128xf32>
    %c1_i32 = arith.constant 1 : i32
    %13 = arith.muli %arg0, %c1_i32 : i32
    %14 = arith.addi %13, %arg1 : i32
    %c16_i32 = arith.constant 16 : i32
    %15 = arith.muli %14, %c16_i32 : i32
    %c16_i32_6 = arith.constant 16 : i32
    %16 = arith.addi %15, %c16_i32_6 : i32
    %c16_i32_7 = arith.constant 16 : i32
    %17 = arith.cmpi sle, %16, %c16_i32_7 : i32
    %18 = arith.extui %17 : i1 to i32
    %c0_i32_8 = arith.constant 0 : i32
    %19 = arith.cmpi ne, %18, %c0_i32_8 : i32
    scf.if %19 {
      %c0_10 = arith.constant 0 : index
      %c0_11 = arith.constant 0 : index
      %23 = vector.load %arg4[%c0_10, %c0_11] : memref<8x128xf32, #tpu.memory_space<vmem>>, vector<8x128xf32>
      %24 = vector.shape_cast %12 : vector<16x128xf32> to vector<2x8x128xf32>
      %cst_12 = arith.constant dense<0.000000e+00> : vector<8x128xf32>
      %25 = vector.multi_reduction <add>, %24, %cst_12 [0] : vector<2x8x128xf32> to vector<8x128xf32>
      %26 = arith.addf %23, %25 : vector<8x128xf32>
      %c0_13 = arith.constant 0 : index
      %c0_14 = arith.constant 0 : index
      %27 = vector.load %arg4[%c0_13, %c0_14] : memref<8x128xf32, #tpu.memory_space<vmem>>, vector<8x128xf32>
      tpu.vector_store %arg4[%c0_13, %c0_14], %26 {strides = array<i32>} : memref<8x128xf32, #tpu.memory_space<vmem>>, vector<8x128xf32>,
    } else {
    }
    %true = arith.constant true
    %20 = arith.xori %17, %true : i1
    %21 = arith.extui %20 : i1 to i32
    %c0_i32_9 = arith.constant 0 : i32
    %22 = arith.cmpi ne, %21, %c0_i32_9 : i32
    scf.if %22 {
      %23 = tpu.iota {dimensions = array<i32: 0>} : vector<16x128xi32>
      %24 = vector.broadcast %15 : i32 to vector<16x128xi32>
      %25 = arith.addi %23, %24 : vector<16x128xi32>
      %c16_i32_10 = arith.constant 16 : i32
      %26 = vector.broadcast %c16_i32_10 : i32 to vector<16x128xi32>
      %27 = arith.cmpi slt, %25, %26 : vector<16x128xi32>
      %cst_11 = arith.constant 0.000000e+00 : f32
      %28 = vector.broadcast %cst_11 : f32 to vector<16x128xf32>
      %29 = arith.select %27, %12, %28 : vector<16x128xi1>, vector<16x128xf32>
      %c0_12 = arith.constant 0 : index
      %c0_13 = arith.constant 0 : index
      %30 = vector.load %arg4[%c0_12, %c0_13] : memref<8x128xf32, #tpu.memory_space<vmem>>, vector<8x128xf32>
      %31 = vector.shape_cast %29 : vector<16x128xf32> to vector<2x8x128xf32>
      %cst_14 = arith.constant dense<0.000000e+00> : vector<8x128xf32>
      %32 = vector.multi_reduction <add>, %31, %cst_14 [0] : vector<2x8x128xf32> to vector<8x128xf32>
      %33 = arith.addf %30, %32 : vector<8x128xf32>
      %c0_15 = arith.constant 0 : index
      %c0_16 = arith.constant 0 : index
      %34 = vector.load %arg4[%c0_15, %c0_16] : memref<8x128xf32, #tpu.memory_space<vmem>>, vector<8x128xf32>
      tpu.vector_store %arg4[%c0_15, %c0_16], %33 {strides = array<i32>} : memref<8x128xf32, #tpu.memory_space<vmem>>, vector<8x128xf32>,
    } else {
    }
    return
  }
  func.func @transform_0(%arg0: i32, %arg1: i32) -> (i32, i32) {
    %c1_i32 = arith.constant 1 : i32
    %0 = arith.muli %arg0, %c1_i32 : i32
    %1 = arith.addi %0, %arg1 : i32
    %c0_i32 = arith.constant 0 : i32
    %c0_i32_0 = arith.constant 0 : i32
    return %1, %c0_i32 : i32, i32
  }
  func.func @transform_1(%arg0: i32, %arg1: i32) -> (i32, i32) {
    %c1_i32 = arith.constant 1 : i32
    %0 = arith.muli %arg0, %c1_i32 : i32
    %1 = arith.addi %0, %arg1 : i32
    %c0_i32 = arith.constant 0 : i32
    %c0_i32_0 = arith.constant 0 : i32
    return %1, %c0_i32 : i32, i32
  }
  func.func @transform_2(%arg0: i32, %arg1: i32) -> (i32, i32) {
    %c0_i32 = arith.constant 0 : i32
    %c0_i32_0 = arith.constant 0 : i32
    return %arg0, %c0_i32 : i32, i32
  }
}

</mosaic_0001>

<bundles_post_ra>
// kernel: tpu_custom_call.1
= control target key start
LH: loop header
LB: loop body
LE: loop exit
PB: predicated region body
PF: predicated region fallthrough
CT: control target
= control target key end

     0   :  { %7 = vsyncpa [#allocation3], 0  ;;  %s219_s0 = inlined_call_operand.hbm [shape: f32[16,128], index: 0, kind: input, shape index: {}]   ;;  %s220_s1 = inlined_call_operand.hbm [shape: f32[16,128], index: 1, kind: input, shape index: {}]   ;;  %s221_s2 = inlined_call_operand.hbm [shape: f32[8,128], index: 2, kind: output, shape index: {}]  }
   0x1   :  { %8 = vsyncpa [#allocation6], 0 }
   0x2   :  { %9 = vsyncpa [#allocation4], 0  ;;  %s189_s9 = smov [#allocation2]  }
   0x3   :  { %s19_s10 = sshll.u32 %s189_s9, 4  ;;  %s20_s10 = int_to_ptr.vmem [resolvable:$true] %s19_s10 }
   0x4   :  { %s131_s11 = scalar_lea.vmem %s20_s10, 256  ;;  %p136_p1 = scmp.lt.s32.totalorder %s20_s10, %s20_s10 }
   0x5   :  { %p132_p0 = scmp.ne.s32.totalorder %s20_s10, %s131_s11  ;;  %p137_p2 = scmp.lt.s32.totalorder %s131_s11, %s131_s11 }
   0x7   :  { %p138_p3 = por %p137_p2, %p136_p1 }
   0x9   :  { %p139_p4 = pnand %p138_p3, %p132_p0 }
   0xb   :  { %142 = shalt.err (!%p139_p4)
}
   0xc   :  { %s190_s12 = smov 128   ;;  %s191_s13 = smov 8  }
   0xd   :  { %25 = dma.hbm_to_vmem [thread:$0]  %s219_s0, 256, %s20_s10, [#allocation3], %s190_s12, %s190_s12, %s191_s13  }
   0xe   :  { %s192_s16 = smov [#allocation5]  }
   0xf   :  { %s35_s17 = sshll.u32 %s192_s16, 4  ;;  %s36_s17 = int_to_ptr.vmem [resolvable:$true] %s35_s17 }
  0x10   :  { %s151_s18 = scalar_lea.vmem %s36_s17, 256  ;;  %p156_p6 = scmp.lt.s32.totalorder %s36_s17, %s36_s17 }
  0x11   :  { %p152_p5 = scmp.ne.s32.totalorder %s36_s17, %s151_s18  ;;  %p157_p7 = scmp.lt.s32.totalorder %s151_s18, %s151_s18 }
  0x13   :  { %p158_p8 = por %p157_p7, %p156_p6 }
  0x15   :  { %p159_p9 = pnand %p158_p8, %p152_p5 }
  0x17   :  { %162 = shalt.err (!%p159_p9)
}
  0x18   :  { %41 = dma.hbm_to_vmem [thread:$0]  %s220_s1, 256, %s36_s17, [#allocation6], %s190_s12, %s190_s12, %s191_s13  }
  0x19   :  { %183 = dma.done.wait [#allocation3], 256  }
  0x1a   :  { %184 = vsyncadd [#allocation3], 4294967040 }
  0x1b   :  { %185 = dma.done.wait [#allocation6], 256  }
  0x1c   :  { %186 = vsyncadd [#allocation6], 4294967040  ;;  %v57_v0 = vld [vmem:[#allocation2] sm:$0xff]  ;;  %v58_v1 = vld [vmem:[#allocation2 + $0x8] sm:$0xff]  ;;  %v193_v6 = vmov 0.25   ;;  %s194_s0 = smov [#allocation7]  }
  0x1d   :  { %v59_v2 = vld [vmem:[#allocation5] sm:$0xff]  ;;  %v60_v3 = vld [vmem:[#allocation5 + $0x8] sm:$0xff]  ;;  %vm65_vm0 = vcmp.gt.f32.partialorder %v57_v0, 0.5  ;;  %vm66_vm1 = vcmp.gt.f32.partialorder %v58_v1, 0.5  ;;  %s106_s1 = sshll.u32 %s194_s0, 4  ;;  %s107_s1 = int_to_ptr.vmem [resolvable:$true] %s106_s1 }
  0x1e   :  { %v61_v4 = vsub.f32 %v57_v0, %v59_v2  ;;  %v62_v5 = vsub.f32 %v58_v1, %v60_v3  ;;  %v67_v7 = vsel %vm65_vm0, 1.0, %v193_v6  ;;  %v68_v9 = vsel %vm66_vm1, 1.0, %v193_v6  ;;  %s163_s21 = scalar_lea.vmem %s107_s1, 128  ;;  %p168_p11 = scmp.lt.s32.totalorder %s107_s1, %s107_s1 }
  0x1f   :  { %p164_p10 = scmp.ne.s32.totalorder %s107_s1, %s163_s21  ;;  %p169_p12 = scmp.lt.s32.totalorder %s163_s21, %s163_s21 }
  0x20   :  { %v63_v8 = vmul.f32 %v61_v4, %v61_v4  ;;  %v64_v10 = vmul.f32 %v62_v5, %v62_v5 }
  0x21   :  { %p170_p13 = por %p169_p12, %p168_p11 }
  0x22   :  { %v69_v11 = vmul.f32 %v67_v7, %v63_v8  ;;  %v70_v12 = vmul.f32 %v68_v9, %v64_v10 }
  0x23   :  { %p171_p0 = pnand %p170_p13, %p164_p10 }
  0x24   :  { %v79_v13 = vadd.f32 %v70_v12, %v69_v11 }
  0x26   :  { %81 = vst [vmem:[#allocation7] sm:$0xff] %v79_v13 }
  0x27   :  { %174 = shalt.err (!%p171_p0)
}
  0x28   :  { %109 = dma.vmem_to_hbm [thread:$0]  %s107_s1, 128, %s221_s2, [#allocation4]  }
  0x29   :  { %187 = dma.done.wait [#allocation4], 128  }
  0x2a   :  { %188 = vsyncadd [#allocation4], 4294967168 }
  0x2b   :  { %113 = vsyncpa [#allocation3], 1 }
  0x2c   :  { %114 = vsyncpa [#allocation6], 1 }
  0x2d   :  { %115 = vsyncpa [#allocation4], 1 }

// kernel: tpu_custom_call.1
= control target key start
LH: loop header
LB: loop body
LE: loop exit
PB: predicated region body
PF: predicated region fallthrough
CT: control target
= control target key end

     0   :  { %7 = vsyncpa [#allocation3], 0  ;;  %s219_s0 = inlined_call_operand.hbm [shape: f32[16,128], index: 0, kind: input, shape index: {}]   ;;  %s220_s1 = inlined_call_operand.hbm [shape: f32[16,128], index: 1, kind: input, shape index: {}]   ;;  %s221_s2 = inlined_call_operand.hbm [shape: f32[8,128], index: 2, kind: output, shape index: {}]  }
   0x1   :  { %8 = vsyncpa [#allocation6], 0 }
   0x2   :  { %9 = vsyncpa [#allocation4], 0  ;;  %s189_s9 = smov [#allocation2]  }
   0x3   :  { %s19_s10 = sshll.u32 %s189_s9, 4  ;;  %s20_s10 = int_to_ptr.vmem [resolvable:$true] %s19_s10 }
   0x4   :  { %s131_s11 = scalar_lea.vmem %s20_s10, 256  ;;  %p136_p1 = scmp.lt.s32.totalorder %s20_s10, %s20_s10 }
   0x5   :  { %p132_p0 = scmp.ne.s32.totalorder %s20_s10, %s131_s11  ;;  %p137_p2 = scmp.lt.s32.totalorder %s131_s11, %s131_s11 }
   0x7   :  { %p138_p3 = por %p137_p2, %p136_p1 }
   0x9   :  { %p139_p4 = pnand %p138_p3, %p132_p0 }
   0xb   :  { %142 = shalt.err (!%p139_p4)
}
   0xc   :  { %s190_s12 = smov 128   ;;  %s191_s13 = smov 8  }
   0xd   :  { %25 = dma.hbm_to_vmem [thread:$0]  %s219_s0, 256, %s20_s10, [#allocation3], %s190_s12, %s190_s12, %s191_s13  }
   0xe   :  { %s192_s16 = smov [#allocation5]  }
   0xf   :  { %s35_s17 = sshll.u32 %s192_s16, 4  ;;  %s36_s17 = int_to_ptr.vmem [resolvable:$true] %s35_s17 }
  0x10   :  { %s151_s18 = scalar_lea.vmem %s36_s17, 256  ;;  %p156_p6 = scmp.lt.s32.totalorder %s36_s17, %s36_s17 }
  0x11   :  { %p152_p5 = scmp.ne.s32.totalorder %s36_s17, %s151_s18  ;;  %p157_p7 = scmp.lt.s32.totalorder %s151_s18, %s151_s18 }
  0x13   :  { %p158_p8 = por %p157_p7, %p156_p6 }
  0x15   :  { %p159_p9 = pnand %p158_p8, %p152_p5 }
  0x17   :  { %162 = shalt.err (!%p159_p9)
}
  0x18   :  { %41 = dma.hbm_to_vmem [thread:$0]  %s220_s1, 256, %s36_s17, [#allocation6], %s190_s12, %s190_s12, %s191_s13  }
  0x19   :  { %183 = dma.done.wait [#allocation3], 256  }
  0x1a   :  { %184 = vsyncadd [#allocation3], 4294967040 }
  0x1b   :  { %185 = dma.done.wait [#allocation6], 256  }
  0x1c   :  { %186 = vsyncadd [#allocation6], 4294967040  ;;  %v57_v0 = vld [vmem:[#allocation2] sm:$0xff]  ;;  %v58_v1 = vld [vmem:[#allocation2 + $0x8] sm:$0xff]  ;;  %v193_v6 = vmov 0.25   ;;  %s194_s0 = smov [#allocation7]  }
  0x1d   :  { %v59_v2 = vld [vmem:[#allocation5] sm:$0xff]  ;;  %v60_v3 = vld [vmem:[#allocation5 + $0x8] sm:$0xff]  ;;  %vm65_vm0 = vcmp.gt.f32.partialorder %v57_v0, 0.5  ;;  %vm66_vm1 = vcmp.gt.f32.partialorder %v58_v1, 0.5  ;;  %s106_s1 = sshll.u32 %s194_s0, 4  ;;  %s107_s1 = int_to_ptr.vmem [resolvable:$true] %s106_s1 }
  0x1e   :  { %v61_v4 = vsub.f32 %v57_v0, %v59_v2  ;;  %v62_v5 = vsub.f32 %v58_v1, %v60_v3  ;;  %v67_v7 = vsel %vm65_vm0, 1.0, %v193_v6  ;;  %v68_v9 = vsel %vm66_vm1, 1.0, %v193_v6  ;;  %s163_s21 = scalar_lea.vmem %s107_s1, 128  ;;  %p168_p11 = scmp.lt.s32.totalorder %s107_s1, %s107_s1 }
  0x1f   :  { %p164_p10 = scmp.ne.s32.totalorder %s107_s1, %s163_s21  ;;  %p169_p12 = scmp.lt.s32.totalorder %s163_s21, %s163_s21 }
  0x20   :  { %v63_v8 = vmul.f32 %v61_v4, %v61_v4  ;;  %v64_v10 = vmul.f32 %v62_v5, %v62_v5 }
  0x21   :  { %p170_p13 = por %p169_p12, %p168_p11 }
  0x22   :  { %v69_v11 = vmul.f32 %v67_v7, %v63_v8  ;;  %v70_v12 = vmul.f32 %v68_v9, %v64_v10 }
  0x23   :  { %p171_p0 = pnand %p170_p13, %p164_p10 }
  0x24   :  { %v79_v13 = vadd.f32 %v70_v12, %v69_v11 }
  0x26   :  { %81 = vst [vmem:[#allocation7] sm:$0xff] %v79_v13 }
  0x27   :  { %174 = shalt.err (!%p171_p0)
}
  0x28   :  { %109 = dma.vmem_to_hbm [thread:$0]  %s107_s1, 128, %s221_s2, [#allocation4]  }
  0x29   :  { %187 = dma.done.wait [#allocation4], 128  }
  0x2a   :  { %188 = vsyncadd [#allocation4], 4294967168 }
  0x2b   :  { %113 = vsyncpa [#allocation3], 1 }
  0x2c   :  { %114 = vsyncpa [#allocation6], 1 }
  0x2d   :  { %115 = vsyncpa [#allocation4], 1 }

</bundles_post_ra>
